<compile_context>
chip_gen: v5e
topology: v5e:2x2
jax: 0.10.0
libtpu: 0.0.40
codegen_flags: <defaults>
</compile_context>

<pallas_src>
import jax
import jax.numpy as jnp
from jax.experimental import pallas as pl
from jax.experimental.pallas import tpu as pltpu


def _round_up(n, m):
    return ((n + m - 1) // m) * m


def mimic_encoder_kernel(x_ref, w1_ref, b1_ref, w2_ref, b2_ref, o_ref):
    # x_ref:  (TB, C*D) f32 (streamed)   w1_ref: (C*D, H) bf16 (pre-scaled 1/C)
    # b1_ref: (1, H)    f32              w2_ref: (H, E)   bf16
    # b2_ref: (1, E)    f32              o_ref:  (TB, E)  f32
    x = x_ref[...].astype(jnp.bfloat16)
    # mean-over-channels + Linear1 fused into one MXU matmul, f32 accumulate.
    h = jnp.dot(x, w1_ref[...], preferred_element_type=jnp.float32)
    h = jnp.maximum(h + b1_ref[...], 0.0)          # bias + ReLU (Dropout=identity)
    out = jnp.dot(h.astype(jnp.bfloat16), w2_ref[...],
                  preferred_element_type=jnp.float32) + b2_ref[...]
    o_ref[...] = out.astype(o_ref.dtype)


def mimic_encoder(x, w1, b1, w2, b2, *, tb=4096):
    """MimicEncoder forward.

    x:  (B, C, D) float32   -- (batch, in_channel, input_size)
    w1: (D, H)    float32   -- first Linear weight, (in, out) layout
    b1: (H,)      float32
    w2: (H, E)    float32   -- second Linear weight, (in, out) layout
    b2: (E,)      float32
    returns (B, E) float32
    """
    B, C, D = x.shape
    H = w1.shape[1]
    E = w2.shape[1]

    # ---- batch tiling (grid over B, partial last block masked) ------------
    TB = min(tb, _round_up(B, 8))
    # Keep >= 2 grid steps when the batch allows it so v7x's second TensorCore
    # has work (harmless on v5e/v6e).
    if B >= 16:
        TB = min(TB, _round_up(pl.cdiv(B, 2), 8))
    grid = (pl.cdiv(B, TB),)

    # ---- wrapper-side layout prep (no extra passes over x) ----------------
    x2 = x.reshape(B, C * D)                                     # free bitcast, stays f32

    # Fold the channel mean into the first matmul: W1' = vstack([w1]*C)/C.
    w1s = (jnp.concatenate([w1] * C, axis=0) * (1.0 / C)).astype(jnp.bfloat16)  # (C*D, H)
    b1_2d = b1.reshape(1, H).astype(jnp.float32)
    w2_bf = w2.astype(jnp.bfloat16)                              # (H, E)
    b2_2d = b2.reshape(1, E).astype(jnp.float32)

    out = pl.pallas_call(
        mimic_encoder_kernel,
        out_shape=jax.ShapeDtypeStruct((B, E), jnp.float32),
        grid=grid,
        in_specs=[
            pl.BlockSpec((TB, C * D), lambda i: (i, 0)),   # x tile (streamed f32)
            pl.BlockSpec((C * D, H), lambda i: (0, 0)),    # W1' resident (bf16)
            pl.BlockSpec((1, H), lambda i: (0, 0)),        # b1 resident
            pl.BlockSpec((H, E), lambda i: (0, 0)),        # W2 resident (bf16)
            pl.BlockSpec((1, E), lambda i: (0, 0)),        # b2 resident
        ],
        out_specs=pl.BlockSpec((TB, E), lambda i: (i, 0)),
        compiler_params=pltpu.CompilerParams(
            dimension_semantics=("parallel",)),            # shard batch tiles on v7x
    )(x2, w1s, b1_2d, w2_bf, b2_2d)

    return out


if __name__ == "__main__":
    # Small shapes consistent with the module:
    #   input_size=16, in_channel=4, encoding_size=8, batch=2
    B, C, D, H, E = 2, 4, 16, 64, 8

    key = jax.random.PRNGKey(0)
    kx, kw1, kb1, kw2, kb2 = jax.random.split(key, 5)

    x = jax.random.normal(kx, (B, C, D), dtype=jnp.float32)

    # Deterministic parameter init (kaiming-uniform-ish bounds like torch Linear),
    # stored directly in (in, out) layout used by the kernel.
    bound1 = 1.0 / (D ** 0.5)
    bound2 = 1.0 / (H ** 0.5)
    w1 = jax.random.uniform(kw1, (D, H), jnp.float32, -bound1, bound1)
    b1 = jax.random.uniform(kb1, (H,), jnp.float32, -bound1, bound1)
    w2 = jax.random.uniform(kw2, (H, E), jnp.float32, -bound2, bound2)
    b2 = jax.random.uniform(kb2, (E,), jnp.float32, -bound2, bound2)

    out = mimic_encoder(x, w1, b1, w2, b2)
    out = jax.block_until_ready(out)

    # Pure-JAX f32 reference of the module's math (mean -> Linear -> ReLU -> Linear).
    ref = jnp.maximum(jnp.mean(x, axis=1) @ w1 + b1, 0.0) @ w2 + b2
    assert out.shape == (B, E)
    # bf16 matmul operands => slightly looser tolerance than pure f32.
    assert jnp.allclose(out, ref, atol=2e-2, rtol=2e-2), "mismatch vs reference"

    print("KERNEL_OK")
</pallas_src>

<mosaic_0001>
module attributes {stable_mosaic.version = 11 : i64} {
  func.func @mimic_encoder_kernel(%arg0: i32, %arg1: memref<8x64xf32, #tpu.memory_space<vmem>>, %arg2: memref<64x64xbf16, #tpu.memory_space<vmem>>, %arg3: memref<1x64xf32, #tpu.memory_space<vmem>>, %arg4: memref<64x8xbf16, #tpu.memory_space<vmem>>, %arg5: memref<1x8xf32, #tpu.memory_space<vmem>>, %arg6: memref<8x8xf32, #tpu.memory_space<vmem>>) attributes {dimension_semantics = [#tpu.dimension_semantics<parallel>], iteration_bounds = array<i64: 1>, scalar_prefetch = 0 : i64, scratch_operands = 0 : i64, tpu.core_type = #tpu.core_type<tc>, window_params = [{transform_indices = @transform_0, window_bounds = array<i64: 8, 64>}, {pipeline_mode = #tpu.pipeline_mode<synchronous>, transform_indices = @transform_1, window_bounds = array<i64: 64, 64>}, {pipeline_mode = #tpu.pipeline_mode<synchronous>, transform_indices = @transform_2, window_bounds = array<i64: 1, 64>}, {pipeline_mode = #tpu.pipeline_mode<synchronous>, transform_indices = @transform_3, window_bounds = array<i64: 64, 8>}, {pipeline_mode = #tpu.pipeline_mode<synchronous>, transform_indices = @transform_4, window_bounds = array<i64: 1, 8>}, {transform_indices = @transform_5, window_bounds = array<i64: 8, 8>}]} {
    %c0 = arith.constant 0 : index
    %c0_0 = arith.constant 0 : index
    %0 = vector.load %arg1[%c0, %c0_0] : memref<8x64xf32, #tpu.memory_space<vmem>>, vector<8x64xf32>
    %1 = arith.truncf %0 : vector<8x64xf32> to vector<8x64xbf16>
    %c0_1 = arith.constant 0 : index
    %c0_2 = arith.constant 0 : index
    %2 = vector.load %arg2[%c0_1, %c0_2] : memref<64x64xbf16, #tpu.memory_space<vmem>>, vector<64x64xbf16>
    %cst = arith.constant dense<0.000000e+00> : vector<8x64xf32>
    %3 = tpu.matmul %1, %2, %cst {dimension_numbers = #tpu.dot_dimension_numbers<[1], [0], [0], [1], [0, 0, 1, 1], [], []>} : vector<8x64xbf16>, vector<64x64xbf16>, vector<8x64xf32> -> vector<8x64xf32>
    %c0_3 = arith.constant 0 : index
    %c0_4 = arith.constant 0 : index
    %4 = vector.load %arg3[%c0_3, %c0_4] : memref<1x64xf32, #tpu.memory_space<vmem>>, vector<1x64xf32>
    %5 = vector.broadcast %4 : vector<1x64xf32> to vector<8x64xf32>
    %6 = arith.addf %3, %5 : vector<8x64xf32>
    %cst_5 = arith.constant 0.000000e+00 : f32
    %7 = vector.broadcast %cst_5 : f32 to vector<8x64xf32>
    %8 = arith.maximumf %6, %7 : vector<8x64xf32>
    %9 = arith.truncf %8 : vector<8x64xf32> to vector<8x64xbf16>
    %c0_6 = arith.constant 0 : index
    %c0_7 = arith.constant 0 : index
    %10 = vector.load %arg4[%c0_6, %c0_7] : memref<64x8xbf16, #tpu.memory_space<vmem>>, vector<64x8xbf16>
    %cst_8 = arith.constant dense<0.000000e+00> : vector<8x8xf32>
    %11 = tpu.matmul %9, %10, %cst_8 {dimension_numbers = #tpu.dot_dimension_numbers<[1], [0], [0], [1], [0, 0, 1, 1], [], []>} : vector<8x64xbf16>, vector<64x8xbf16>, vector<8x8xf32> -> vector<8x8xf32>
    %c0_9 = arith.constant 0 : index
    %c0_10 = arith.constant 0 : index
    %12 = vector.load %arg5[%c0_9, %c0_10] : memref<1x8xf32, #tpu.memory_space<vmem>>, vector<1x8xf32>
    %13 = vector.broadcast %12 : vector<1x8xf32> to vector<8x8xf32>
    %14 = arith.addf %11, %13 : vector<8x8xf32>
    %c0_11 = arith.constant 0 : index
    %c0_12 = arith.constant 0 : index
    %15 = vector.load %arg6[%c0_11, %c0_12] : memref<8x8xf32, #tpu.memory_space<vmem>>, vector<8x8xf32>
    tpu.vector_store %arg6[%c0_11, %c0_12], %14 {strides = array<i32>} : memref<8x8xf32, #tpu.memory_space<vmem>>, vector<8x8xf32>,
    return
  }
  func.func @transform_0(%arg0: i32) -> (i32, i32) {
    %c0_i32 = arith.constant 0 : i32
    %c0_i32_0 = arith.constant 0 : i32
    return %arg0, %c0_i32 : i32, i32
  }
  func.func @transform_1(%arg0: i32) -> (i32, i32) {
    %c0_i32 = arith.constant 0 : i32
    %c0_i32_0 = arith.constant 0 : i32
    %c0_i32_1 = arith.constant 0 : i32
    return %c0_i32, %c0_i32_0 : i32, i32
  }
  func.func @transform_2(%arg0: i32) -> (i32, i32) {
    %c0_i32 = arith.constant 0 : i32
    %c0_i32_0 = arith.constant 0 : i32
    %c0_i32_1 = arith.constant 0 : i32
    return %c0_i32, %c0_i32_0 : i32, i32
  }
  func.func @transform_3(%arg0: i32) -> (i32, i32) {
    %c0_i32 = arith.constant 0 : i32
    %c0_i32_0 = arith.constant 0 : i32
    %c0_i32_1 = arith.constant 0 : i32
    return %c0_i32, %c0_i32_0 : i32, i32
  }
  func.func @transform_4(%arg0: i32) -> (i32, i32) {
    %c0_i32 = arith.constant 0 : i32
    %c0_i32_0 = arith.constant 0 : i32
    %c0_i32_1 = arith.constant 0 : i32
    return %c0_i32, %c0_i32_0 : i32, i32
  }
  func.func @transform_5(%arg0: i32) -> (i32, i32) {
    %c0_i32 = arith.constant 0 : i32
    %c0_i32_0 = arith.constant 0 : i32
    return %arg0, %c0_i32 : i32, i32
  }
}

</mosaic_0001>

<bundles_post_ra>
// kernel: tpu_custom_call.1
= control target key start
LH: loop header
LB: loop body
LE: loop exit
PB: predicated region body
PF: predicated region fallthrough
CT: control target
= control target key end

     0   :  { %10 = vsyncpa [#allocation3], 0  ;;  %vm60_vm0 = vcmask 523264   ;;  %vm131_vm1 = vcmask 64512   ;;  %s293_s0 = inlined_call_operand.vmem [shape: f32[2,64], index: 0, kind: input, shape index: {}]   ;;  %s294_s1 = inlined_call_operand.vmem [shape: bf16[64,64], index: 1, kind: input, shape index: {}]   ;;  %s295_s2 = inlined_call_operand.vmem [shape: f32[1,64], index: 2, kind: input, shape index: {}]   ;;  %s296_s3 = inlined_call_operand.vmem [shape: bf16[64,8], index: 3, kind: input, shape index: {}]   ;;  %s297_s4 = inlined_call_operand.vmem [shape: f32[1,8], index: 4, kind: input, shape index: {}]   ;;  %s298_s5 = inlined_call_operand.hbm [shape: f32[2,8], index: 5, kind: output, shape index: {}]  }
   0x1   :  { %v188_v0 = vld [vmem:[%s294_s1 + $0x18] sm:$0xff]  ;;  %v187_v1 = vld [vmem:[%s294_s1 + $0x10] sm:$0xff]  ;;  %v186_v4 = vld [vmem:[%s294_s1 + $0x8] sm:$0xff] }
   0x2   :  { %68 = vmatpush.bf16.msra.mxu0 %v188_v0  ;;  %v192_v2 = vld [vmem:[%s296_s3 + $0x18] sm:$0xff]  ;;  %v191_v3 = vld [vmem:[%s296_s3 + $0x10] sm:$0xff]  ;;  %v185_v5 = vld [vmem:[%s294_s1] sm:$0xff] }
   0x3   :  { %122 = vmatpush.bf16.msra.mxu1 %v192_v2  ;;  %v22_v6 = vld [vmem:[%s293_s0] sm:$0xff]  ;;  %v190_v8 = vld [vmem:[%s296_s3 + $0x8] sm:$0xff] }
   0x4   :  { %v23_v7 = vpack.c.bf16 %v22_v6, %v22_v6  ;;  %v189_v9 = vld [vmem:[%s296_s3] sm:$0xff] }
   0x5   :  { %v196_v10 = vld [vmem:[%s295_s2] ss:$0 sm:$0xff] }
   0x6   :  { %69 = vmatpush.bf16.msra.mxu0 %v187_v1  ;;  %v197_v16 = vld [vmem:[%s297_s4] ss:$0 sm:$0xff] }
   0x7   :  { %123 = vmatpush.bf16.msra.mxu1 %v191_v3 }
   0xa   :  { %70 = vmatpush.bf16.msra.mxu0 %v186_v4 }
   0xb   :  { %124 = vmatpush.bf16.msra.mxu1 %v190_v8 }
   0xe   :  { %71 = vmatpush.bf16.msra.mxu0 %v185_v5 }
   0xf   :  { %125 = vmatpush.bf16.msra.mxu1 %v189_v9 }
  0x11   :  { %167 = vmatmul.msk.bf16.vlgmr.msra.gmra.mxu0 %vm60_vm0, %v23_v7 }
  0x8e   :  { %v73_v11 = vpop.f32.mrf.mxu0 }
  0x8f   :  { %v74_v12 = vadd.f32 %v196_v10, %v73_v11 }
  0x91   :  { %v77_v13 = vmax.f32 %v74_v12, 0.0 }
  0x93   :  { %v78_v14 = vpack.c.bf16 %v77_v13, %v77_v13 }
  0x95   :  { %184 = vmatmul.msk.bf16.vlgmr.msra.gmra.mxu1 %vm60_vm0, %v78_v14 }
  0x96   :  { %v75_v15 = vpop.f32.mrf.mxu0 }
 0x112   :  { %v127_v17 = vpop.f32.mrf.mxu1 }
 0x113   :  { %v128_v18 = vadd.f32 %v197_v16, %v127_v17 }
 0x115   :  { %132 = vst.msk [vmem:[#allocation2] sm:$0xff] %vm131_vm1, %v128_v18 }
 0x11a   :  { %v129_v19 = vpop.f32.mrf.mxu1 }
 0x11b   :  { %136 = vsyncadd [#allocation3], 96  ;;  %s139_s2 = sshll.u32 %s298_s5, 4  ;;  %s224_s14 = smov [#allocation2]   ;;  %s140_s2 = int_to_ptr.hbm [resolvable:$true] %s139_s2 }
 0x11c   :  { %s137_s15 = sshll.u32 %s224_s14, 4  ;;  %s225_s16 = smov 32   ;;  %s138_s15 = int_to_ptr.vmem [resolvable:$true] %s137_s15 }
 0x11d   :  { %s226_s17 = smov 2  }
 0x11e   :  { %145 = dma.vmem_to_hbm [thread:$0]  %s138_s15, 32, %s140_s2, [#allocation3], %s225_s16, %s225_s16, %s226_s17  }
 0x11f   :  { %222 = dma.done.wait [#allocation3], 128  }
 0x120   :  { %223 = vsyncadd [#allocation3], 4294967168 }
 0x121   :  { %150 = vsyncpa [#allocation3], 1 }

</bundles_post_ra>
